<compile_context>
chip_gen: v6e
topology: v6e:2x2x1
jax: 0.10.0
libtpu: 0.0.40
codegen_flags: <defaults>
</compile_context>

<pallas_src>
import functools
import math

import jax
import jax.numpy as jnp
from jax import lax
from jax.experimental import pallas as pl
from jax.experimental.pallas import tpu as pltpu


def _round_up(a, b):
    return (a + b - 1) // b * b


# --------------------------------------------------------------------------
# kernel
# --------------------------------------------------------------------------
def _gumbel_hier_kernel(sample, temperature, y_sz, z_sz, sub, *refs):
    """One grid step over a (tm, D) row tile, processed in `sub`-row chunks."""
    Y, Z = y_sz, z_sz
    if sample:
        x_ref, m_ref, g_ref, e_ref, wx_ref, bx_ref, wy_ref, out_ref = refs
    else:
        x_ref, m_ref, wx_ref, bx_ref, wy_ref, out_ref = refs
        g_ref = e_ref = None

    wx = wx_ref[...]            # (D, Y+2Z) bf16, resident across chunks
    bx = bx_ref[...]            # (1, Y+2Z) f32
    wy = wy_ref[...]            # (Y, 2Z)  bf16
    inv_t = 1.0 / temperature

    def chunk(r0):
        rows = pl.ds(r0, sub)
        x = x_ref[rows, :]                                          # (sub, D) bf16

        # fused x-side matmul: [alpha_logits | mean_x | logvar_x]
        hx = jnp.dot(x, wx, preferred_element_type=jnp.float32) + bx

        # alphas = softmax(alpha_mlp(inputs))
        logits = hx[:, :Y]
        ls = logits - jnp.max(logits, axis=-1, keepdims=True)
        e = jnp.exp(ls)
        se = jnp.sum(e, axis=-1, keepdims=True)
        alphas = e * pl.reciprocal(se, approx=True)

        # y = gumbel_softmax(alphas, temperature, sample)
        if sample:
            # log-softmax reuse: log(alphas) == ls - log(se)
            gl = (ls - jnp.log(se) + g_ref[rows, :]) * inv_t
            gl = gl - jnp.max(gl, axis=-1, keepdims=True)
            ge = jnp.exp(gl)
            y = ge * pl.reciprocal(jnp.sum(ge, axis=-1, keepdims=True),
                                   approx=True)
        else:
            y = alphas

        # fused y-side matmul: [mean_y | logvar_y]
        hy = jnp.dot(y.astype(jnp.bfloat16), wy,
                     preferred_element_type=jnp.float32)
        mean = hx[:, Y:Y + Z] + hy[:, :Z]
        logvar = hx[:, Y + Z:] + hy[:, Z:]

        mk = m_ref[rows, :]                                         # (sub, 1)
        if sample:
            z = (mean + jnp.exp(0.5 * logvar) * e_ref[rows, :]) * mk
        else:
            z = mean * mk

        # tight packed slab: [z | y | alphas | mean | logvar]
        out_ref[rows, :] = jnp.concatenate([z, y, alphas, mean, logvar],
                                           axis=-1)

    n_sub = x_ref.shape[0] // sub
    if n_sub == 1:
        chunk(0)
    else:
        def body(c, carry):
            chunk(pl.multiple_of(c * sub, sub))
            return carry
        lax.fori_loop(0, n_sub, body, 0, unroll=True)


# --------------------------------------------------------------------------
# parameters (mimics nn.Linear default init); q_mean/q_logvar weights are
# split into an x-part and a y-part so the cat([inputs, y]) matmul can be
# realized as two fused matmuls.
# --------------------------------------------------------------------------
def init_params(key, input_size, latent_y_size, latent_z_size):
    keys = jax.random.split(key, 6)

    def lin(kw, kb, fan_in, fan_out):
        b = 1.0 / math.sqrt(fan_in)
        W = jax.random.uniform(kw, (fan_in, fan_out), jnp.float32, -b, b)
        bias = jax.random.uniform(kb, (1, fan_out), jnp.float32, -b, b)
        return W, bias

    D, Y, Z = input_size, latent_y_size, latent_z_size
    wa, ba = lin(keys[0], keys[1], D, Y)
    wm, bm = lin(keys[2], keys[3], D + Y, Z)
    wl, bl = lin(keys[4], keys[5], D + Y, Z)
    return dict(wa=wa, ba=ba,
                wmx=wm[:D], wmy=wm[D:], bm=bm,
                wlx=wl[:D], wly=wl[D:], bl=bl)


def _vmem_estimate(t, D, Y, Z, W, sample):
    """Rough per-kernel VMEM bytes (double-buffered blocks + weights + slack)."""
    est = 2 * t * D * 2            # x (bf16)
    est += 2 * t * W * 4           # packed output (f32)
    est += 2 * t * 1 * 4           # mask
    if sample:
        est += 2 * t * (Y + Z) * 4  # gumbel + normal noise
    est += 2 * (D * (Y + 2 * Z) * 2 + (Y + 2 * Z) * 4 + Y * 2 * Z * 2)  # weights
    est += 6 * min(t, 256) * max(W, Y + 2 * Z) * 4                      # live temps
    return est


# --------------------------------------------------------------------------
# wrapper
# --------------------------------------------------------------------------
def gumbel_hier_layer(params, inputs, mask, sample, *, temperature=0.1,
                      key=None, tm=512):
    """Forward pass. inputs: (B, T, D) f32, mask: (B, T) f32."""
    B, T, D = inputs.shape
    Y = params["wa"].shape[1]
    Z = params["wmx"].shape[1]
    N = B * T
    W = 2 * Y + 3 * Z                      # tight packed width

    # fused weights: one x-matmul and one y-matmul per chunk (bf16 on the MXU)
    wx = jnp.concatenate([params["wa"], params["wmx"], params["wlx"]],
                         axis=1).astype(jnp.bfloat16)                  # (D, Y+2Z)
    bx = jnp.concatenate([params["ba"], params["bm"], params["bl"]],
                         axis=1).astype(jnp.float32)                   # (1, Y+2Z)
    wy = jnp.concatenate([params["wmy"], params["wly"]],
                         axis=1).astype(jnp.bfloat16)                  # (Y, 2Z)

    # --- row tiling: >=2 grid steps when N allows (v7x 2 TCs), 16-row aligned,
    #     shrink until the VMEM estimate fits a conservative budget ------------
    tm_cap = max(16, _round_up((N + 1) // 2, 16))
    tm_eff = min(tm, tm_cap)
    while tm_eff > 64 and _vmem_estimate(tm_eff, D, Y, Z, W, sample) > (16 << 20):
        tm_eff = max(64, _round_up(tm_eff // 2, 16))
    sub = 256 if (tm_eff > 256 and tm_eff % 256 == 0) else tm_eff
    n_pad = _round_up(N, tm_eff)

    x = inputs.reshape(N, D).astype(jnp.bfloat16)
    m = mask.reshape(N, 1).astype(jnp.float32)
    if n_pad != N:
        x = jnp.pad(x, ((0, n_pad - N), (0, 0)))
        m = jnp.pad(m, ((0, n_pad - N), (0, 0)))    # padded rows: mask = 0

    row = lambda i: (i, 0)
    full = lambda i: (0, 0)

    in_specs = [pl.BlockSpec((tm_eff, D), row),      # x rows (bf16)
                pl.BlockSpec((tm_eff, 1), row)]      # per-row mask
    args = [x, m]

    if sample:
        if key is None:
            raise ValueError("sample=True requires a PRNG key")
        kg, ke = jax.random.split(key)
        # noise generated host-side (pltpu stateful PRNG has no interpret path)
        g = jax.random.gumbel(kg, (n_pad, Y), jnp.float32)
        eps = jax.random.normal(ke, (n_pad, Z), jnp.float32)
        in_specs += [pl.BlockSpec((tm_eff, Y), row),
                     pl.BlockSpec((tm_eff, Z), row)]
        args += [g, eps]

    in_specs += [pl.BlockSpec((D, Y + 2 * Z), full),   # fused x-weights (bf16)
                 pl.BlockSpec((1, Y + 2 * Z), full),   # fused biases (f32)
                 pl.BlockSpec((Y, 2 * Z), full)]       # fused y-weights (bf16)
    args += [wx, bx, wy]

    kernel = functools.partial(_gumbel_hier_kernel, bool(sample),
                               float(temperature), Y, Z, sub)

    packed = pl.pallas_call(
        kernel,
        out_shape=jax.ShapeDtypeStruct((n_pad, W), jnp.float32),
        grid_spec=pltpu.PrefetchScalarGridSpec(
            num_scalar_prefetch=0,
            grid=(n_pad // tm_eff,),
            in_specs=in_specs,
            out_specs=pl.BlockSpec((tm_eff, W), row)),
        compiler_params=pltpu.CompilerParams(
            dimension_semantics=("parallel",),
            vmem_limit_bytes=32 * 1024 * 1024),
    )(*args)

    packed = packed[:N]
    z = packed[:, 0:Z]
    y = packed[:, Z:Z + Y]
    alphas = packed[:, Z + Y:Z + 2 * Y]
    mean_qs = packed[:, Z + 2 * Y:2 * Z + 2 * Y]
    logvar_qs = packed[:, 2 * Z + 2 * Y:3 * Z + 2 * Y]

    return (z.reshape(B, T, Z),
            y.reshape(B, T, Y),
            mean_qs.reshape(B, T, Z),
            logvar_qs.reshape(B, T, Z),
            alphas.reshape(B, T, Y))


# --------------------------------------------------------------------------
# pure-JAX reference (deterministic path) and self-test
# --------------------------------------------------------------------------
def _reference_det(params, inputs, mask):
    x = inputs.astype(jnp.float32)
    alphas = jax.nn.softmax(x @ params["wa"] + params["ba"][0], axis=-1)
    y = alphas
    mean = x @ params["wmx"] + y @ params["wmy"] + params["bm"][0]
    logvar = x @ params["wlx"] + y @ params["wly"] + params["bl"][0]
    z = mean * mask[..., None]
    return z, y, mean, logvar, alphas


if __name__ == "__main__":
    configs = [
        (2, 8, 32, 16, 16),      # tiny: single tile, single sub-chunk
        (2, 37, 32, 16, 16),     # 2 grid steps + row padding
        (4, 256, 32, 16, 16),    # 2 grid steps, 2 unrolled 256-row sub-chunks
    ]
    for (B, T, D, Y, Z) in configs:
        key = jax.random.PRNGKey(0)
        kp, kx, km, kn = jax.random.split(key, 4)

        params = init_params(kp, D, Y, Z)
        inputs = jax.random.normal(kx, (B, T, D), jnp.float32)
        mask = (jax.random.uniform(km, (B, T)) > 0.2).astype(jnp.float32)

        # deterministic path: y = alphas, z = mean * mask
        out_det = gumbel_hier_layer(params, inputs, mask, sample=False)
        # stochastic path: gumbel-softmax y, reparameterized gaussian z
        out_samp = gumbel_hier_layer(params, inputs, mask, sample=True, key=kn)
        jax.block_until_ready(out_det)
        jax.block_until_ready(out_samp)

        # check deterministic path vs pure JAX (bf16 matmuls -> 2e-2 tolerance)
        ref = _reference_det(params, inputs, mask)
        for got, want in zip(out_det, ref):
            assert got.shape == want.shape
            err = float(jnp.max(jnp.abs(got - want)))
            assert err < 2e-2, f"det mismatch {err} at cfg {(B, T, D, Y, Z)}"

        # sanity checks on the stochastic path
        z_s, y_s, mean_s, logvar_s, alphas_s = out_samp
        for a in out_samp:
            assert a.dtype == jnp.float32
            assert bool(jnp.all(jnp.isfinite(a)))
        assert float(jnp.max(jnp.abs(jnp.sum(alphas_s, -1) - 1.0))) < 1e-2
        assert float(jnp.max(jnp.abs(jnp.sum(y_s, -1) - 1.0))) < 1e-2

    print("KERNEL_OK")
</pallas_src>

<mosaic_0001>
module attributes {stable_mosaic.version = 11 : i64} {
  func.func @_gumbel_hier_kernel(%arg0: i32, %arg1: memref<16x32xbf16, #tpu.memory_space<vmem>>, %arg2: memref<16x1xf32, #tpu.memory_space<vmem>>, %arg3: memref<32x48xbf16, #tpu.memory_space<vmem>>, %arg4: memref<1x48xf32, #tpu.memory_space<vmem>>, %arg5: memref<16x32xbf16, #tpu.memory_space<vmem>>, %arg6: memref<16x80xf32, #tpu.memory_space<vmem>>) attributes {dimension_semantics = [#tpu.dimension_semantics<parallel>], iteration_bounds = array<i64: 1>, scalar_prefetch = 0 : i64, scratch_operands = 0 : i64, tpu.core_type = #tpu.core_type<tc>, window_params = [{transform_indices = @transform_0, window_bounds = array<i64: 16, 32>}, {transform_indices = @transform_1, window_bounds = array<i64: 16, 1>}, {pipeline_mode = #tpu.pipeline_mode<synchronous>, transform_indices = @transform_2, window_bounds = array<i64: 32, 48>}, {pipeline_mode = #tpu.pipeline_mode<synchronous>, transform_indices = @transform_3, window_bounds = array<i64: 1, 48>}, {pipeline_mode = #tpu.pipeline_mode<synchronous>, transform_indices = @transform_4, window_bounds = array<i64: 16, 32>}, {transform_indices = @transform_5, window_bounds = array<i64: 16, 80>}]} {
    %c0 = arith.constant 0 : index
    %c0_0 = arith.constant 0 : index
    %0 = vector.load %arg3[%c0, %c0_0] : memref<32x48xbf16, #tpu.memory_space<vmem>>, vector<32x48xbf16>
    %c0_1 = arith.constant 0 : index
    %c0_2 = arith.constant 0 : index
    %1 = vector.load %arg4[%c0_1, %c0_2] : memref<1x48xf32, #tpu.memory_space<vmem>>, vector<1x48xf32>
    %c0_3 = arith.constant 0 : index
    %c0_4 = arith.constant 0 : index
    %2 = vector.load %arg5[%c0_3, %c0_4] : memref<16x32xbf16, #tpu.memory_space<vmem>>, vector<16x32xbf16>
    %c0_5 = arith.constant 0 : index
    %c0_6 = arith.constant 0 : index
    %3 = vector.load %arg1[%c0_5, %c0_6] : memref<16x32xbf16, #tpu.memory_space<vmem>>, vector<16x32xbf16>
    %cst = arith.constant dense<0.000000e+00> : vector<16x48xf32>
    %4 = tpu.matmul %3, %0, %cst {dimension_numbers = #tpu.dot_dimension_numbers<[1], [0], [0], [1], [0, 0, 1, 1], [], []>} : vector<16x32xbf16>, vector<32x48xbf16>, vector<16x48xf32> -> vector<16x48xf32>
    %5 = vector.broadcast %1 : vector<1x48xf32> to vector<16x48xf32>
    %6 = arith.addf %4, %5 : vector<16x48xf32>
    %7 = vector.extract_strided_slice %6 {offsets = [0, 0], sizes = [16, 16], strides = [1, 1]} : vector<16x48xf32> to vector<16x16xf32>
    %cst_7 = arith.constant dense<0xFF800000> : vector<16xf32>
    %8 = vector.multi_reduction <maximumf>, %7, %cst_7 [1] : vector<16x16xf32> to vector<16xf32>
    %9 = vector.shape_cast %8 : vector<16xf32> to vector<16x1xf32>
    %10 = vector.broadcast %9 : vector<16x1xf32> to vector<16x16xf32>
    %11 = arith.subf %7, %10 : vector<16x16xf32>
    %12 = math.exp %11 : vector<16x16xf32>
    %cst_8 = arith.constant dense<0.000000e+00> : vector<16xf32>
    %13 = vector.multi_reduction <add>, %12, %cst_8 [1] : vector<16x16xf32> to vector<16xf32>
    %14 = vector.shape_cast %13 : vector<16xf32> to vector<16x1xf32>
    %15 = tpu.reciprocal %14 {approx = true} : vector<16x1xf32> -> vector<16x1xf32>
    %16 = vector.broadcast %15 : vector<16x1xf32> to vector<16x16xf32>
    %17 = arith.mulf %12, %16 : vector<16x16xf32>
    %18 = arith.truncf %17 : vector<16x16xf32> to vector<16x16xbf16>
    %cst_9 = arith.constant dense<0.000000e+00> : vector<16x32xf32>
    %19 = tpu.matmul %18, %2, %cst_9 {dimension_numbers = #tpu.dot_dimension_numbers<[1], [0], [0], [1], [0, 0, 1, 1], [], []>} : vector<16x16xbf16>, vector<16x32xbf16>, vector<16x32xf32> -> vector<16x32xf32>
    %20 = vector.extract_strided_slice %6 {offsets = [0, 16], sizes = [16, 16], strides = [1, 1]} : vector<16x48xf32> to vector<16x16xf32>
    %21 = vector.extract_strided_slice %19 {offsets = [0, 0], sizes = [16, 16], strides = [1, 1]} : vector<16x32xf32> to vector<16x16xf32>
    %22 = arith.addf %20, %21 : vector<16x16xf32>
    %23 = vector.extract_strided_slice %6 {offsets = [0, 32], sizes = [16, 16], strides = [1, 1]} : vector<16x48xf32> to vector<16x16xf32>
    %24 = vector.extract_strided_slice %19 {offsets = [0, 16], sizes = [16, 16], strides = [1, 1]} : vector<16x32xf32> to vector<16x16xf32>
    %25 = arith.addf %23, %24 : vector<16x16xf32>
    %c0_10 = arith.constant 0 : index
    %c0_11 = arith.constant 0 : index
    %26 = vector.load %arg2[%c0_10, %c0_11] : memref<16x1xf32, #tpu.memory_space<vmem>>, vector<16x1xf32>
    %27 = vector.broadcast %26 : vector<16x1xf32> to vector<16x16xf32>
    %28 = arith.mulf %22, %27 : vector<16x16xf32>
    %29 = tpu.concatenate %28, %17, %17, %22, %25 in 1 : vector<16x16xf32>, vector<16x16xf32>, vector<16x16xf32>, vector<16x16xf32>, vector<16x16xf32> -> vector<16x80xf32>
    %c0_12 = arith.constant 0 : index
    %c0_13 = arith.constant 0 : index
    %30 = vector.load %arg6[%c0_12, %c0_13] : memref<16x80xf32, #tpu.memory_space<vmem>>, vector<16x80xf32>
    tpu.vector_store %arg6[%c0_12, %c0_13], %29 {strides = array<i32>} : memref<16x80xf32, #tpu.memory_space<vmem>>, vector<16x80xf32>,
    return
  }
  func.func @transform_0(%arg0: i32) -> (i32, i32) {
    %c0_i32 = arith.constant 0 : i32
    %c0_i32_0 = arith.constant 0 : i32
    return %arg0, %c0_i32 : i32, i32
  }
  func.func @transform_1(%arg0: i32) -> (i32, i32) {
    %c0_i32 = arith.constant 0 : i32
    %c0_i32_0 = arith.constant 0 : i32
    return %arg0, %c0_i32 : i32, i32
  }
  func.func @transform_2(%arg0: i32) -> (i32, i32) {
    %c0_i32 = arith.constant 0 : i32
    %c0_i32_0 = arith.constant 0 : i32
    %c0_i32_1 = arith.constant 0 : i32
    return %c0_i32, %c0_i32_0 : i32, i32
  }
  func.func @transform_3(%arg0: i32) -> (i32, i32) {
    %c0_i32 = arith.constant 0 : i32
    %c0_i32_0 = arith.constant 0 : i32
    %c0_i32_1 = arith.constant 0 : i32
    return %c0_i32, %c0_i32_0 : i32, i32
  }
  func.func @transform_4(%arg0: i32) -> (i32, i32) {
    %c0_i32 = arith.constant 0 : i32
    %c0_i32_0 = arith.constant 0 : i32
    %c0_i32_1 = arith.constant 0 : i32
    return %c0_i32, %c0_i32_0 : i32, i32
  }
  func.func @transform_5(%arg0: i32) -> (i32, i32) {
    %c0_i32 = arith.constant 0 : i32
    %c0_i32_0 = arith.constant 0 : i32
    return %arg0, %c0_i32 : i32, i32
  }
}

</mosaic_0001>

<bundles_post_ra>
// kernel: tpu_custom_call.1
= control target key start
LH: loop header
LB: loop body
LE: loop exit
PB: predicated region body
PF: predicated region fallthrough
CT: control target
= control target key end

     0   :  { %10 = vsyncpa [#allocation3], 0  ;;  %s480_s0 = inlined_call_operand.hbm [shape: bf16[16,32], index: 0, kind: input, shape index: {}]   ;;  %s481_s1 = inlined_call_operand.vmem [shape: f32[16,1], index: 1, kind: input, shape index: {}]   ;;  %s482_s2 = inlined_call_operand.vmem [shape: bf16[32,48], index: 2, kind: input, shape index: {}]   ;;  %s483_s3 = inlined_call_operand.hbm [shape: f32[1,48], index: 3, kind: input, shape index: {}]   ;;  %s484_s4 = inlined_call_operand.vmem [shape: bf16[16,32], index: 4, kind: input, shape index: {}]   ;;  %s485_s5 = inlined_call_operand.hbm [shape: f32[16,80], index: 5, kind: output, shape index: {}]  }
   0x1   :  { %11 = vsyncpa [#allocation6], 0 }
   0x2   :  { %12 = vsyncpa [#allocation4], 0  ;;  %s403_s18 = smov [#allocation2]  }
   0x3   :  { %s18_s19 = sshll.u32 %s403_s18, 4  ;;  %s19_s19 = int_to_ptr.vmem [resolvable:$true] %s18_s19 }
   0x4   :  { %s345_s20 = scalar_lea.vmem %s19_s19, 128  ;;  %p350_p1 = scmp.lt.s32.totalorder %s19_s19, %s19_s19 }
   0x5   :  { %p346_p0 = scmp.ne.s32.totalorder %s19_s19, %s345_s20  ;;  %p351_p2 = scmp.lt.s32.totalorder %s345_s20, %s345_s20 }
   0x7   :  { %p352_p3 = por %p351_p2, %p350_p1 }
   0x9   :  { %p353_p4 = pnand %p352_p3, %p346_p0 }
   0xb   :  { %356 = shalt.err (!%p353_p4)
}
   0xc   :  { %s404_s21 = smov 64   ;;  %s405_s22 = smov 4  }
   0xd   :  { %24 = dma.hbm_to_vmem [thread:$0]  %s480_s0, 128, %s19_s19, [#allocation3], %s404_s21, %s404_s21, %s405_s22  }
   0xe   :  { %s406_s25 = smov [#allocation5]  }
   0xf   :  { %s35_s26 = sshll.u32 %s406_s25, 4  ;;  %s36_s26 = int_to_ptr.vmem [resolvable:$true] %s35_s26 }
  0x10   :  { %s365_s27 = scalar_lea.vmem %s36_s26, 16  ;;  %s369_s28 = scalar_lea.vmem %s36_s26, 32 }
  0x11   :  { %p366_p5 = scmp.ne.s32.totalorder %s36_s26, %s365_s27  ;;  %p370_p6 = scmp.lt.s32.totalorder %s36_s26, %s36_s26 }
  0x12   :  { %p371_p7 = scmp.lt.s32.totalorder %s369_s28, %s365_s27 }
  0x14   :  { %p372_p8 = por %p371_p7, %p370_p6 }
  0x16   :  { %p373_p9 = pnand %p372_p8, %p366_p5 }
  0x18   :  { %376 = shalt.err (!%p373_p9)
}
  0x19   :  { %38 = dma.hbm_to_vmem [thread:$0]  %s483_s3, 16, %s36_s26, [#allocation6]  }
  0x1a   :  { %397 = dma.done.wait [#allocation3], 128  }
  0x1b   :  { %398 = vsyncadd [#allocation3], 4294967168 }
  0x1c   :  { %399 = dma.done.wait [#allocation6], 16  }
  0x1d   :  { %400 = vsyncadd [#allocation6], 4294967280  ;;  %v407_v0 = vmov 0.0   ;;  %vm408_vm0 = vmmov 0   ;;  %v325_v1 = vld [vmem:[%s482_s2 + $0x8] sm:$0xff]   ;;  %v326_v2 = vld [vmem:[%s482_s2] sm:$0xff]  }
  0x1e   :  { %296 = vmatprep.subr.bf16.mxu0 %v407_v0  ;;  %300 = vmatprep.mubr.msk.bf16.mxu0 %vm408_vm0, %v407_v0  ;;  %v327_v3 = vld [vmem:[#allocation2] sm:$0xff]   ;;  %vm80_vm1 = vcmask 261120   ;;  %v284_v4 = vld [vmem:[#allocation5] ss:$0 sm:$0xff]  ;;  %vm125_vm2 = vcmask 130048   ;;  %v409_v25 = vmov 0  }
  0x1f   :  { %304 = vmatprep.subr.bf16.mxu1 %v407_v0  ;;  %306 = vmatprep.mubr.msk.bf16.mxu1 %vm408_vm0, %v407_v0  ;;  %v209_v23 = vld [vmem:[%s481_s1] sm:$0xff]  ;;  %v210_v28 = vld [vmem:[%s481_s1 + $0x8] sm:$0xff]  ;;  %s410_s13 = smov 32   ;;  %s412_s1 = smov 112   ;;  %vm257_vm3 = vcmask 392192   ;;  %vm260_vm4 = vcmask 523264  }
  0x20   :  { %297 = vmatpush3.bf16.msra.mxu0 %v325_v1  ;;  %v328_v24 = vld [vmem:[%s484_s4] sm:$0xff]   ;;  %323 = vset.pattern.permute.xlu0 %v409_v25  ;;  %s411_s4 = smov 16   ;;  %s413_s14 = smov [#allocation7]   ;;  %vm263_vm5 = vcmask 654336  }
  0x21   :  { %298 = vmatprep.subr.bf16.mxu0 %v407_v0  ;;  %324 = vset.pattern.permute.xlu1 %v409_v25  ;;  %s271_s15 = sshll.u32 %s413_s14, 4  ;;  %s272_s15 = int_to_ptr.vmem [resolvable:$true] %s271_s15 }
  0x22   :  { %305 = vmatpush3.bf16.msra.mxu1 %v328_v24  ;;  %s377_s16 = scalar_lea.vmem %s272_s15, 256  ;;  %p382_p11 = scmp.lt.s32.totalorder %s272_s15, %s272_s15 }
  0x23   :  { %p378_p10 = scmp.ne.s32.totalorder %s272_s15, %s377_s16  ;;  %p383_p12 = scmp.lt.s32.totalorder %s377_s16, %s377_s16 }
  0x24   :  { %299 = vmatpush3.bf16.msra.mxu0 %v326_v2 }
  0x25   :  { %p384_p13 = por %p383_p12, %p382_p11 }
  0x27   :  { %301 = vmatmul.mubr.msk.bf16.vlgmr.msra.gmra.mxu0 %vm80_vm1, %v327_v3  ;;  %p385_p0 = pnand %p384_p13, %p378_p10 }
  0xe7   :  { %v118_v5 = vpop.f32.mrf.mxu0 }
  0xe8   :  { %v119_v6 = vadd.f32 %v284_v4, %v118_v5 }
  0xe9   :  { %v302_v7 = vpop.f32.mrf.mxu0 }
  0xea   :  { %v126_v8 = vsel %vm125_vm2, %v119_v6, -inf }
  0xeb   :  { %127 = vmax.xlane.f32.xlu0 %v126_v8  ;;  %v121_v9 = vpop.f32.mrf.mxu0 }
  0xec   :  { %v122_v10 = vadd.f32 %v284_v4, %v121_v9 }
  0xed   :  { %v303_v11 = vpop.f32.mrf.mxu0 }
  0xee   :  { %v129_v12 = vsel %vm125_vm2, %v122_v10, -inf }
  0xef   :  { %130 = vmax.xlane.f32.xlu0 %v129_v12 }
 0x105   :  { %213 = vperm.xlu0 %323, %v209_v23  }
 0x174   :  { %v128_v13 = vpop.xlane.xlu0 %127 }
 0x175   :  { %v132_v14 = vsub.f32 %v119_v6, %v128_v13 }
 0x177   :  { %v134_v15 = vmul.f32 1.442695, %v132_v14 }
 0x178   :  { %v131_v16 = vpop.xlane.xlu0 %130 }
 0x179   :  { %329 = vpow2.f32 %v134_v15  ;;  %v133_v17 = vsub.f32 %v122_v10, %v131_v16 }
 0x17b   :  { %v136_v18 = vmul.f32 1.442695, %v133_v17 }
 0x17d   :  { %331 = vpow2.f32 %v136_v18 }
 0x180   :  { %v214_v41 = vpop.permute.xlu0 %213 }
 0x186   :  { %v330_v19 = vpop.eup %329 }
 0x187   :  { %v138_v20 = vsel %vm125_vm2, %v330_v19, 0.0 }
 0x188   :  { %139 = vadd.xlane.f32.xlu1 %v138_v20 }
 0x18a   :  { %v332_v21 = vpop.eup %331 }
 0x18b   :  { %v141_v22 = vsel %vm125_vm2, %v332_v21, 0.0 }
 0x18c   :  { %142 = vadd.xlane.f32.xlu1 %v141_v22 }
 0x19d   :  { %218 = vperm.xlu1 %324, %v210_v28  }
 0x211   :  { %v140_v26 = vpop.xlane.xlu1 %139 }
 0x212   :  { %333 = vrcp.f32 %v140_v26 }
 0x215   :  { %v143_v27 = vpop.xlane.xlu1 %142 }
 0x216   :  { %335 = vrcp.f32 %v143_v27 }
 0x219   :  { %v219_v38 = vpop.permute.xlu1 %218 }
 0x21f   :  { %v334_v29 = vpop.eup %333 }
 0x220   :  { %v146_v32 = vmul.f32 %v334_v29, %v330_v19 }
 0x223   :  { %v336_v30 = vpop.eup %335 }
 0x224   :  { %v147_v31 = vmul.f32 %v336_v30, %v332_v21 }
 0x226   :  { %241 = vrot.lane.b32.xlu0 %v147_v31, %s410_s13  ;;  %v148_v33 = vpack.c.bf16 %v147_v31, %v146_v32 }
 0x228   :  { %307 = vmatmul.mubr.msk.bf16.vlgmr.msra.gmra.mxu1 %vm125_vm2, %v148_v33 }
 0x298   :  { %v242_v50 = vpop.permute.xlu0 %241 }
 0x2e8   :  { %v192_v34 = vpop.f32.mrf.mxu1 }
 0x2e9   :  { %201 = vrot.lane.b32.xlu1 %v192_v34, %s411_s4 }
 0x2ea   :  { %v308_v35 = vpop.f32.mrf.mxu1 }
 0x2ec   :  { %v195_v36 = vpop.f32.mrf.mxu1 }
 0x2ed   :  { %203 = vrot.lane.b32.xlu1 %v195_v36, %s411_s4 }
 0x2ee   :  { %v309_v37 = vpop.f32.mrf.mxu1 }
 0x2f1   :  { %233 = vrot.lane.b32.xlu1 %v146_v32, %s411_s4 }
 0x2f5   :  { %235 = vrot.lane.b32.xlu1 %v147_v31, %s411_s4 }
 0x2f9   :  { %239 = vrot.lane.b32.xlu1 %v146_v32, %s410_s13 }
 0x35b   :  { %v202_v39 = vpop.permute.xlu1 %201 }
 0x35c   :  { %v207_v40 = vadd.f32 %v202_v39, %v119_v6 }
 0x35e   :  { %v221_v42 = vmul.f32 %v214_v41, %v207_v40 }
 0x35f   :  { %v204_v43 = vpop.permute.xlu1 %203 }
 0x360   :  { %v208_v44 = vadd.f32 %v204_v43, %v122_v10  ;;  %225 = vrot.lane.b32.xlu1 %v221_v42, %s412_s1 }
 0x362   :  { %v222_v45 = vmul.f32 %v219_v38, %v208_v44  ;;  %249 = vrot.lane.b32.xlu0 %v208_v44, %s410_s13 }
 0x363   :  { %v234_v46 = vpop.permute.xlu1 %233 }
 0x364   :  { %227 = vrot.lane.b32.xlu1 %v222_v45, %s412_s1 }
 0x367   :  { %v236_v47 = vpop.permute.xlu1 %235 }
 0x368   :  { %247 = vrot.lane.b32.xlu1 %v207_v40, %s410_s13 }
 0x36b   :  { %v240_v48 = vpop.permute.xlu1 %239 }
 0x3d2   :  { %v226_v49 = vpop.permute.xlu1 %225 }
 0x3d3   :  { %v253_v52 = vsel %vm125_vm2, %v226_v49, %v234_v46 }
 0x3d4   :  { %v250_v54 = vpop.permute.xlu0 %249  ;;  %v255_v57 = vsel %vm80_vm1, %v253_v52, %v240_v48 }
 0x3d6   :  { %v228_v51 = vpop.permute.xlu1 %227 }
 0x3d7   :  { %v254_v53 = vsel %vm125_vm2, %v228_v51, %v236_v47 }
 0x3d8   :  { %v256_v55 = vsel %vm80_vm1, %v254_v53, %v242_v50 }
 0x3d9   :  { %v259_v56 = vsel %vm257_vm3, %v256_v55, %v250_v54 }
 0x3da   :  { %v248_v58 = vpop.permute.xlu1 %247  ;;  %v262_v59 = vsel %vm260_vm4, %v259_v56, %v250_v54 }
 0x3db   :  { %v258_v60 = vsel %vm257_vm3, %v255_v57, %v248_v58  ;;  %265 = vst.msk [vmem:[#allocation7 + $0x8] sm:$0xff] %vm263_vm5, %v262_v59 }
 0x3dc   :  { %v261_v61 = vsel %vm260_vm4, %v258_v60, %v248_v58 }
 0x3dd   :  { %264 = vst.msk [vmem:[#allocation7] sm:$0xff] %vm263_vm5, %v261_v61 }
 0x3de   :  { %388 = shalt.err (!%p385_p0)
}
 0x3df   :  { %s414_s17 = smov 128   ;;  %s415_s18 = smov 8  }
 0x3e0   :  { %277 = dma.vmem_to_hbm [thread:$0]  %s272_s15, 256, %s485_s5, [#allocation4], %s414_s17, %s414_s17, %s415_s18  }
 0x3e1   :  { %401 = dma.done.wait [#allocation4], 256  }
 0x3e2   :  { %402 = vsyncadd [#allocation4], 4294967040 }
 0x3e3   :  { %281 = vsyncpa [#allocation3], 1 }
 0x3e4   :  { %282 = vsyncpa [#allocation6], 1 }
 0x3e5   :  { %283 = vsyncpa [#allocation4], 1 }

</bundles_post_ra>
